<compile_context>
chip_gen: v7x
topology: tpu7x:2x2x1
jax: 0.10.0
libtpu: 0.0.40
codegen_flags: <defaults>
</compile_context>

<pallas_src>
import functools

import jax
import jax.numpy as jnp
from jax.experimental import pallas as pl
from jax.experimental.pallas import tpu as pltpu


# ---------------------------------------------------------------------------
# Pallas kernel: full GCN stack + global mean pool, one graph per grid step
# ---------------------------------------------------------------------------

def _gcn_stack_pool_kernel(*refs, num_layers):
    """refs = (a_ref, x_ref, w0, b0, w1, b1, ..., o_ref).

    a_ref : (1, N, N)       bf16  normalized adjacency block of this graph
    x_ref : (1, N, F0)      bf16  node features of this graph
    w_l   : (F_l, F_{l+1})  bf16
    b_l   : (1, F_{l+1})    f32
    o_ref : (1, 1, F_last)  f32   per-graph mean-pooled latent
    """
    a_ref, x_ref, o_ref = refs[0], refs[1], refs[-1]
    a = a_ref[0]                           # (N, N)  bf16
    h = x_ref[0]                           # (N, F0) bf16
    h_f32 = h.astype(jnp.float32)
    for l in range(num_layers):            # unrolled at trace time (small depth)
        w_ref = refs[2 + 2 * l]
        b_ref = refs[3 + 2 * l]
        fin, fout = w_ref.shape            # static block shape
        if fin <= fout:
            # Aggregate first: the O(N^2) matmul runs on the narrower feature dim.
            agg = jnp.dot(a, h, preferred_element_type=jnp.float32)
            z = jnp.dot(agg.astype(jnp.bfloat16), w_ref[...],
                        preferred_element_type=jnp.float32)
        else:
            hw = jnp.dot(h, w_ref[...], preferred_element_type=jnp.float32)
            z = jnp.dot(a, hw.astype(jnp.bfloat16),
                        preferred_element_type=jnp.float32)
        h_f32 = jnp.tanh(z + b_ref[...])   # f32 bias + tanh epilogue (VPU/EUP)
        h = h_f32.astype(jnp.bfloat16)
    # GlobalMeanPool fused into the epilogue: mean over the node axis.
    o_ref[0] = jnp.mean(h_f32, axis=0, keepdims=True).astype(o_ref.dtype)


def gcn_stack_pool(a_norm, x, params):
    """mean_pool( tanh(A @ h @ W_l + b_l) for all layers l ), per graph.

    a_norm : (B, N, N)  per-graph normalized adjacency
    x      : (B, N, F0) node features
    params : list of (W (F_l, F_{l+1}), b (F_{l+1},)) float32
    returns: (B, F_last) float32
    """
    num_graphs, n_nodes, _ = a_norm.shape
    f0 = x.shape[-1]
    num_layers = len(params)
    f_last = params[-1][0].shape[1] if num_layers else f0

    # NOTE: per-graph (N, N) blocks easily fit VMEM at these sizes; for very
    # large N the row axis of A would additionally be tiled (8,128)-aligned.
    in_specs = [
        pl.BlockSpec((1, n_nodes, n_nodes), lambda b: (b, 0, 0)),
        pl.BlockSpec((1, n_nodes, f0), lambda b: (b, 0, 0)),
    ]
    operands = [a_norm.astype(jnp.bfloat16), x.astype(jnp.bfloat16)]

    flops = 0
    transcendentals = 0
    for (w, bias) in params:
        fi, fo = w.shape
        in_specs.append(pl.BlockSpec((fi, fo), lambda b: (0, 0)))
        in_specs.append(pl.BlockSpec((1, fo), lambda b: (0, 0)))
        operands.append(w.astype(jnp.bfloat16))
        operands.append(bias.reshape(1, fo).astype(jnp.float32))
        flops += 2 * n_nodes * n_nodes * min(fi, fo) + 2 * n_nodes * fi * fo
        transcendentals += n_nodes * fo
    flops *= num_graphs
    transcendentals *= num_graphs
    bytes_accessed = sum(int(o.size) * o.dtype.itemsize for o in operands)
    bytes_accessed += num_graphs * f_last * 4

    out = pl.pallas_call(
        functools.partial(_gcn_stack_pool_kernel, num_layers=num_layers),
        out_shape=jax.ShapeDtypeStruct((num_graphs, 1, f_last), jnp.float32),
        grid=(num_graphs,),
        in_specs=in_specs,
        out_specs=pl.BlockSpec((1, 1, f_last), lambda b: (b, 0, 0)),
        compiler_params=pltpu.CompilerParams(
            # Graphs are independent -> shard across TensorCores on v7x.
            dimension_semantics=("parallel",)),
        cost_estimate=pl.CostEstimate(flops=flops,
                                      transcendentals=transcendentals,
                                      bytes_accessed=bytes_accessed),
    )(*operands)
    return out.reshape(num_graphs, f_last)


# ---------------------------------------------------------------------------
# Glue: per-graph normalized adjacency (GCNConv default: self-loops + gcn_norm)
# ---------------------------------------------------------------------------

def build_normalized_adjacency_blocks(edge_index, num_graphs, nodes_per_graph):
    """Per-graph A_norm = D^{-1/2} (A + I) D^{-1/2} with in-degree (PyG gcn_norm).

    edge_index: (2, B, E) with GLOBAL node ids (b*N + local), as produced by the
    PyTorch pipeline.  Edges connect nodes within the same graph, so the batched
    adjacency is block-diagonal and only the (B, N, N) blocks are materialized.
    """
    ei = edge_index.astype(jnp.int32)
    offsets = (jnp.arange(num_graphs, dtype=jnp.int32)
               * nodes_per_graph)[None, :, None]
    local = ei - offsets                               # (2, B, E) local ids
    src, tgt = local[0], local[1]                      # (B, E)
    b_idx = jnp.broadcast_to(
        jnp.arange(num_graphs, dtype=jnp.int32)[:, None], src.shape)
    adj = jnp.zeros((num_graphs, nodes_per_graph, nodes_per_graph), jnp.float32)
    adj = adj.at[b_idx, tgt, src].add(1.0)             # A[t, s] = #edges s->t
    adj = adj + jnp.eye(nodes_per_graph, dtype=jnp.float32)[None]
    deg = jnp.sum(adj, axis=2)                         # in-degree + 1  (>= 1)
    dinv = jnp.where(deg > 0, jax.lax.rsqrt(deg), 0.0)
    return dinv[:, :, None] * adj * dinv[:, None, :]


# ---------------------------------------------------------------------------
# GnnExtractor (forward only)
# ---------------------------------------------------------------------------

class GnnExtractorPallas:
    def __init__(self, feature_dim, net_arch, key):
        num_nodes, node_feature_dim, node_embedding_dim = feature_dim
        del num_nodes, node_embedding_dim  # unused in forward (as in PyTorch)

        if isinstance(net_arch, dict):
            pi_dims = list(net_arch.get("pi", []))
            vf_dims = list(net_arch.get("vf", []))
        else:
            pi_dims = vf_dims = list(net_arch)

        def make_net(dims, k):
            params = []
            last = node_feature_dim
            for d in dims:
                k, kw = jax.random.split(k)
                limit = (6.0 / (last + d)) ** 0.5       # Glorot-uniform
                w = jax.random.uniform(kw, (last, d), jnp.float32,
                                       -limit, limit)
                b = jnp.zeros((d,), jnp.float32)
                params.append((w, b))
                last = d
            return params, last

        kpi, kvf = jax.random.split(key)
        self.pi_params, self.latent_dim_pi = make_net(pi_dims, kpi)
        self.vf_params, self.latent_dim_vf = make_net(vf_dims, kvf)

        # Fuse pi/vf stacks into one lane-denser stack (exact):
        #   layer 0:   W = [W_pi | W_vf]          (shared input features)
        #   layer l>0: W = blockdiag(W_pi, W_vf)  (inputs are [h_pi | h_vf])
        self.fusable = len(pi_dims) == len(vf_dims) and len(pi_dims) > 0
        if self.fusable:
            fused = []
            for li, ((wp, bp), (wv, bv)) in enumerate(
                    zip(self.pi_params, self.vf_params)):
                if li == 0:
                    w = jnp.concatenate([wp, wv], axis=1)
                else:
                    w = jnp.block(
                        [[wp, jnp.zeros((wp.shape[0], wv.shape[1]), wp.dtype)],
                         [jnp.zeros((wv.shape[0], wp.shape[1]), wv.dtype), wv]])
                fused.append((w, jnp.concatenate([bp, bv], axis=0)))
            self.fused_params = fused

    # -- helpers ------------------------------------------------------------
    @staticmethod
    def _prep(x, edge_index):
        b, n, _ = x.shape
        a_norm = build_normalized_adjacency_blocks(edge_index, b, n)
        return a_norm.astype(jnp.bfloat16), x.astype(jnp.bfloat16)

    # -- public API ---------------------------------------------------------
    def forward_actor(self, features):
        x, edge_index = features
        a, xb = self._prep(x, edge_index)
        return gcn_stack_pool(a, xb, self.pi_params)

    def forward_critic(self, features):
        x, edge_index = features
        a, xb = self._prep(x, edge_index)
        return gcn_stack_pool(a, xb, self.vf_params)

    def forward(self, features):
        x, edge_index = features
        a, xb = self._prep(x, edge_index)        # adjacency built ONCE per call
        if self.fusable:
            out = gcn_stack_pool(a, xb, self.fused_params)
            return (out[:, :self.latent_dim_pi],
                    out[:, self.latent_dim_pi:])
        return (gcn_stack_pool(a, xb, self.pi_params),
                gcn_stack_pool(a, xb, self.vf_params))


# ---------------------------------------------------------------------------
# Pure-JAX f32 reference (for the correctness check in main)
# ---------------------------------------------------------------------------

def _reference(params, a_norm_f32, x_f32):
    h = x_f32.astype(jnp.float32)
    for (w, b) in params:
        h = jnp.tanh(jnp.einsum("bij,bjf->bif", a_norm_f32, h) @ w + b)
    return jnp.mean(h, axis=1)


# ---------------------------------------------------------------------------
# Main
# ---------------------------------------------------------------------------

if __name__ == "__main__":
    key = jax.random.PRNGKey(0)

    B, N, F, EMB = 2, 8, 4, 16        # batch, nodes/graph, node feat dim, (unused) emb dim
    E = 12                            # edges per graph
    net_arch = [32, 32]

    k_x, k_src, k_tgt, k_params = jax.random.split(key, 4)

    x = jax.random.normal(k_x, (B, N, F), jnp.float32)

    # edge_index: (2, B, E) with GLOBAL node ids so reshape(2, -1) matches
    # PyTorch's edge_index.view(2, -1).
    src_local = jax.random.randint(k_src, (B, E), 0, N)
    tgt_local = jax.random.randint(k_tgt, (B, E), 0, N)
    offsets = (jnp.arange(B) * N)[:, None]
    edge_index = jnp.stack([src_local + offsets, tgt_local + offsets],
                           axis=0).astype(jnp.int32)

    extractor = GnnExtractorPallas((N, F, EMB), net_arch, k_params)

    latent_pi, latent_vf = extractor.forward((x, edge_index))
    jax.block_until_ready((latent_pi, latent_vf))

    assert latent_pi.shape == (B, extractor.latent_dim_pi)
    assert latent_vf.shape == (B, extractor.latent_dim_vf)
    assert jnp.all(jnp.isfinite(latent_pi)) and jnp.all(jnp.isfinite(latent_vf))

    # Compare against a pure-JAX f32 reference (bf16 MXU inputs -> loose tol).
    a_f32 = build_normalized_adjacency_blocks(edge_index, B, N)
    ref_pi = _reference(extractor.pi_params, a_f32, x)
    ref_vf = _reference(extractor.vf_params, a_f32, x)
    assert float(jnp.max(jnp.abs(latent_pi - ref_pi))) < 0.08, "pi mismatch"
    assert float(jnp.max(jnp.abs(latent_vf - ref_vf))) < 0.08, "vf mismatch"

    print("KERNEL_OK")
</pallas_src>

<mosaic_0001>
module attributes {stable_mosaic.version = 11 : i64} {
  func.func @_gcn_stack_pool_kernel(%arg0: i32, %arg1: memref<1x8x8xbf16, #tpu.memory_space<vmem>>, %arg2: memref<1x8x4xbf16, #tpu.memory_space<vmem>>, %arg3: memref<4x64xbf16, #tpu.memory_space<vmem>>, %arg4: memref<1x64xf32, #tpu.memory_space<vmem>>, %arg5: memref<64x64xbf16, #tpu.memory_space<vmem>>, %arg6: memref<1x64xf32, #tpu.memory_space<vmem>>, %arg7: memref<1x1x64xf32, #tpu.memory_space<vmem>>) attributes {dimension_semantics = [#tpu.dimension_semantics<parallel>], iteration_bounds = array<i64: 2>, scalar_prefetch = 0 : i64, scratch_operands = 0 : i64, tpu.core_type = #tpu.core_type<tc>, window_params = [{transform_indices = @transform_0, window_bounds = array<i64: 1, 8, 8>}, {transform_indices = @transform_1, window_bounds = array<i64: 1, 8, 4>}, {pipeline_mode = #tpu.pipeline_mode<synchronous>, transform_indices = @transform_2, window_bounds = array<i64: 4, 64>}, {pipeline_mode = #tpu.pipeline_mode<synchronous>, transform_indices = @transform_3, window_bounds = array<i64: 1, 64>}, {pipeline_mode = #tpu.pipeline_mode<synchronous>, transform_indices = @transform_4, window_bounds = array<i64: 64, 64>}, {pipeline_mode = #tpu.pipeline_mode<synchronous>, transform_indices = @transform_5, window_bounds = array<i64: 1, 64>}, {transform_indices = @transform_6, window_bounds = array<i64: 1, 1, 64>}]} {
    %c0 = arith.constant 0 : index
    %c0_0 = arith.constant 0 : index
    %c0_1 = arith.constant 0 : index
    %0 = vector.load %arg1[%c0, %c0_0, %c0_1] : memref<1x8x8xbf16, #tpu.memory_space<vmem>>, vector<1x8x8xbf16>
    %1 = vector.shape_cast %0 : vector<1x8x8xbf16> to vector<8x8xbf16>
    %c0_2 = arith.constant 0 : index
    %c0_3 = arith.constant 0 : index
    %c0_4 = arith.constant 0 : index
    %2 = vector.load %arg2[%c0_2, %c0_3, %c0_4] : memref<1x8x4xbf16, #tpu.memory_space<vmem>>, vector<1x8x4xbf16>
    %3 = vector.shape_cast %2 : vector<1x8x4xbf16> to vector<8x4xbf16>
    %cst = arith.constant dense<0.000000e+00> : vector<8x4xf32>
    %4 = tpu.matmul %1, %3, %cst {dimension_numbers = #tpu.dot_dimension_numbers<[1], [0], [0], [1], [0, 0, 1, 1], [], []>} : vector<8x8xbf16>, vector<8x4xbf16>, vector<8x4xf32> -> vector<8x4xf32>
    %5 = arith.truncf %4 : vector<8x4xf32> to vector<8x4xbf16>
    %c0_5 = arith.constant 0 : index
    %c0_6 = arith.constant 0 : index
    %6 = vector.load %arg3[%c0_5, %c0_6] : memref<4x64xbf16, #tpu.memory_space<vmem>>, vector<4x64xbf16>
    %cst_7 = arith.constant dense<0.000000e+00> : vector<8x64xf32>
    %7 = tpu.matmul %5, %6, %cst_7 {dimension_numbers = #tpu.dot_dimension_numbers<[1], [0], [0], [1], [0, 0, 1, 1], [], []>} : vector<8x4xbf16>, vector<4x64xbf16>, vector<8x64xf32> -> vector<8x64xf32>
    %c0_8 = arith.constant 0 : index
    %c0_9 = arith.constant 0 : index
    %8 = vector.load %arg4[%c0_8, %c0_9] : memref<1x64xf32, #tpu.memory_space<vmem>>, vector<1x64xf32>
    %9 = vector.broadcast %8 : vector<1x64xf32> to vector<8x64xf32>
    %10 = arith.addf %7, %9 : vector<8x64xf32>
    %11 = math.tanh %10 : vector<8x64xf32>
    %12 = arith.truncf %11 : vector<8x64xf32> to vector<8x64xbf16>
    %cst_10 = arith.constant dense<0.000000e+00> : vector<8x64xf32>
    %13 = tpu.matmul %1, %12, %cst_10 {dimension_numbers = #tpu.dot_dimension_numbers<[1], [0], [0], [1], [0, 0, 1, 1], [], []>} : vector<8x8xbf16>, vector<8x64xbf16>, vector<8x64xf32> -> vector<8x64xf32>
    %14 = arith.truncf %13 : vector<8x64xf32> to vector<8x64xbf16>
    %c0_11 = arith.constant 0 : index
    %c0_12 = arith.constant 0 : index
    %15 = vector.load %arg5[%c0_11, %c0_12] : memref<64x64xbf16, #tpu.memory_space<vmem>>, vector<64x64xbf16>
    %cst_13 = arith.constant dense<0.000000e+00> : vector<8x64xf32>
    %16 = tpu.matmul %14, %15, %cst_13 {dimension_numbers = #tpu.dot_dimension_numbers<[1], [0], [0], [1], [0, 0, 1, 1], [], []>} : vector<8x64xbf16>, vector<64x64xbf16>, vector<8x64xf32> -> vector<8x64xf32>
    %c0_14 = arith.constant 0 : index
    %c0_15 = arith.constant 0 : index
    %17 = vector.load %arg6[%c0_14, %c0_15] : memref<1x64xf32, #tpu.memory_space<vmem>>, vector<1x64xf32>
    %18 = vector.broadcast %17 : vector<1x64xf32> to vector<8x64xf32>
    %19 = arith.addf %16, %18 : vector<8x64xf32>
    %20 = math.tanh %19 : vector<8x64xf32>
    %cst_16 = arith.constant dense<0.000000e+00> : vector<64xf32>
    %21 = vector.multi_reduction <add>, %20, %cst_16 [0] : vector<8x64xf32> to vector<64xf32>
    %22 = vector.shape_cast %21 : vector<64xf32> to vector<1x64xf32>
    %cst_17 = arith.constant 8.000000e+00 : f32
    %23 = vector.broadcast %cst_17 : f32 to vector<1x64xf32>
    %24 = arith.divf %22, %23 : vector<1x64xf32>
    %c0_18 = arith.constant 0 : index
    %c0_19 = arith.constant 0 : index
    %c0_20 = arith.constant 0 : index
    %25 = vector.load %arg7[%c0_18, %c0_19, %c0_20] : memref<1x1x64xf32, #tpu.memory_space<vmem>>, vector<1x1x64xf32>
    %26 = vector.shape_cast %25 : vector<1x1x64xf32> to vector<1x64xf32>
    %27 = vector.shape_cast %24 : vector<1x64xf32> to vector<1x1x64xf32>
    tpu.vector_store %arg7[%c0_18, %c0_19, %c0_20], %27 {strides = array<i32>} : memref<1x1x64xf32, #tpu.memory_space<vmem>>, vector<1x1x64xf32>,
    return
  }
  func.func @transform_0(%arg0: i32) -> (i32, i32, i32) {
    %c0_i32 = arith.constant 0 : i32
    %c0_i32_0 = arith.constant 0 : i32
    %c0_i32_1 = arith.constant 0 : i32
    return %arg0, %c0_i32, %c0_i32_0 : i32, i32, i32
  }
  func.func @transform_1(%arg0: i32) -> (i32, i32, i32) {
    %c0_i32 = arith.constant 0 : i32
    %c0_i32_0 = arith.constant 0 : i32
    %c0_i32_1 = arith.constant 0 : i32
    return %arg0, %c0_i32, %c0_i32_0 : i32, i32, i32
  }
  func.func @transform_2(%arg0: i32) -> (i32, i32) {
    %c0_i32 = arith.constant 0 : i32
    %c0_i32_0 = arith.constant 0 : i32
    %c0_i32_1 = arith.constant 0 : i32
    return %c0_i32, %c0_i32_0 : i32, i32
  }
  func.func @transform_3(%arg0: i32) -> (i32, i32) {
    %c0_i32 = arith.constant 0 : i32
    %c0_i32_0 = arith.constant 0 : i32
    %c0_i32_1 = arith.constant 0 : i32
    return %c0_i32, %c0_i32_0 : i32, i32
  }
  func.func @transform_4(%arg0: i32) -> (i32, i32) {
    %c0_i32 = arith.constant 0 : i32
    %c0_i32_0 = arith.constant 0 : i32
    %c0_i32_1 = arith.constant 0 : i32
    return %c0_i32, %c0_i32_0 : i32, i32
  }
  func.func @transform_5(%arg0: i32) -> (i32, i32) {
    %c0_i32 = arith.constant 0 : i32
    %c0_i32_0 = arith.constant 0 : i32
    %c0_i32_1 = arith.constant 0 : i32
    return %c0_i32, %c0_i32_0 : i32, i32
  }
  func.func @transform_6(%arg0: i32) -> (i32, i32, i32) {
    %c0_i32 = arith.constant 0 : i32
    %c0_i32_0 = arith.constant 0 : i32
    %c0_i32_1 = arith.constant 0 : i32
    return %arg0, %c0_i32, %c0_i32_0 : i32, i32, i32
  }
}

</mosaic_0001>

<bundles_post_ra>
// kernel: tpu_custom_call.1
= control target key start
LH: loop header
LB: loop body
LE: loop exit
PB: predicated region body
PF: predicated region fallthrough
CT: control target
= control target key end

     0   :  { %11 = vsyncpa [#allocation3], 0  ;;  %s1035_s0 = inlined_call_operand.vmem [shape: bf16[2,8,8], index: 0, kind: input, shape index: {}]   ;;  %s1036_s1 = inlined_call_operand.vmem [shape: bf16[2,8,4], index: 1, kind: input, shape index: {}]   ;;  %s1037_s2 = inlined_call_operand.vmem [shape: bf16[4,64], index: 2, kind: input, shape index: {}]   ;;  %s1038_s3 = inlined_call_operand.vmem [shape: f32[1,64], index: 3, kind: input, shape index: {}]   ;;  %s1039_s4 = inlined_call_operand.hbm [shape: bf16[64,64], index: 4, kind: input, shape index: {}]   ;;  %s1040_s5 = inlined_call_operand.vmem [shape: f32[1,64], index: 5, kind: input, shape index: {}]   ;;  %s1041_s6 = inlined_call_operand.hbm [shape: f32[2,1,64], index: 6, kind: output, shape index: {}]  }
   0x1   :  { %12 = vsyncpa [#allocation4], 0 }
   0x2   :  { %14 = vsyncpa [#allocation4 + $0x1], 0  ;;  %s880_s21 = smov 0   ;;  %s882_s22 = smov 0  }
   0x3   :  { %s884_s23 = smov 0   ;;  %s886_s24 = smov 0  }
   0x4 LB: > { %s901_s25 = sadd.s32 4294967295, %s837_s24   ;;  %s619_s26 = sadd.s32 4294967294, %s837_s24   ;;  %s837_s24 = sphi %s886_s24, %s1057_s24   ;;  %s833_s23 = sphi %s884_s23, %s1056_s23   ;;  %s829_s22 = sphi %s882_s22, %s1055_s22   ;;  %s825_s21 = sphi %s880_s21, %s1054_s21  }
   0x5   : > { %s905_s27 = sadd.s32 1, %s837_s24   ;;  %s163_s28 = sadd.s32 1, %s833_s23 }
   0x6   : > { %s160_s29 = ssub.s32 %s837_s24, %s905_s27  ;;  %p173_p0 = scmp.ne.s32.totalorder %s833_s23, %s829_s22 }
   0x7   : > { %p161_p1 = scmp.eq.s32.totalorder %s160_s29, 0  ;;  %p174_p2 = scmp.eq.s32.totalorder %s901_s25, 1 }
   0x8   : > { %p179_p3 = scmp.ne.s32.totalorder %s829_s22, %s825_s21  ;;  %p180_p4 = scmp.eq.s32.totalorder %s619_s26, 1 }
   0x9   : > { %s916_s30 = scalar_select %p161_p1, %s833_s23, %s163_s28  }
   0xa   : > { %p918_p5 = por %p174_p2, %p173_p0  ;;  %p922_p6 = por %p180_p4, %p179_p3 }
   0xb   : > { %p620_p7 = scmp.ge.s32.totalorder %s837_s24, 1  ;;  %p187_p8 = scmp.lt.s32.totalorder %s837_s24, 3 }
   0xc   : > { %s1045_s7 = scalar_select %p918_p5, 1, 0 }
   0xd   : > { %s1046_s8 = scalar_select %p922_p6, 1, 0 }
   0xe   : > { %p1042_p9 = scmp.eq.s32.totalorder %s901_s25, 0  ;;  %p929_p10 = pnand %p620_p7, %p187_p8 }
   0xf   : > { %s839_s10 = smov [#allocation2]   ;;  %s743_s15 = scalar_lea.hbm %s1039_s4, 512 }
  0x10   : > { %s1047_s9 = scalar_select %p929_p10, 1, 0 }
  0x11   : > { %s205_s11 = sshll.u32 %s839_s10, 4  ;;  %p687_p11 = pneg %p929_p10  ;;  %s206_s11 = int_to_ptr.vmem [resolvable:$true] %s205_s11 }
  0x12   : > { %p744_p13 = scmp.ne.s32.totalorder %s1039_s4, %s743_s15  ;;  %p750_p3 = scmp.lt.u32.totalorder %s743_s15, %s1039_s4 }
  0x13   : > { %p937_p12 = pnand %p1042_p9, %p687_p11 }
  0x15   : > { %p745_p0 = pneg %p937_p12 }
  0x17   : > { %p746_p1 = pnand %p745_p0, %p744_p13 }
  0x19   : > { %p747_p2 = pneg %p746_p1 }
  0x1b   : > { %p752_p4 = pnand %p750_p3, %p747_p2 }
  0x1d   : > { %755 = shalt.err (!%p752_p4)
}
  0x1e   : > { %s756_s20 = scalar_lea.vmem %s206_s11, 512  ;;  %p764_p9 = scmp.lt.s32.totalorder %s206_s11, %s206_s11 }
  0x1f   : > { %p757_p7 = scmp.ne.s32.totalorder %s206_s11, %s756_s20  ;;  %p765_p6 = scmp.lt.s32.totalorder %s756_s20, %s756_s20 }
  0x21   : > { %p759_p8 = pnand %p757_p7, %p745_p0  ;;  %p766_p5 = por %p765_p6, %p764_p9 }
  0x23   : > { %p760_p11 = pneg %p759_p8 }
  0x25   : > { %p767_p10 = pnand %p766_p5, %p760_p11 }
  0x27   : > { %770 = shalt.err (!%p767_p10)
}
  0x28   : > { %s840_s26 = smov 64   ;;  %s841_s28 = smov 4  }
  0x29   : > { %690 = dma.hbm_to_vmem [thread:$0]  (!%p937_p12), %s1039_s4, 512, %s206_s11, [#allocation3], %s840_s26, %s840_s26, %s841_s28  }
  0x2a   : > { %p1049_p13 = scmp.ne.s32.totalorder %s1047_s9, 0 }
  0x2b   : > { %p1050_p1 = scmp.eq.s32.totalorder (!%p1049_p13), %s901_s25, 0 }
  0x2c   : > { %238 = sbr.rel (%p1049_p13) target bundleno = 976 (0x3d0), region = 44 }
  0x33   : > { %816 = dma.done.wait (%p1050_p1), [#allocation3], 512   ;;  %p1051_p0 = pmov %p1050_p1 }
  0x34   : > { %p270_p5 = scmp.lt.s32.totalorder %s901_s25, 1  ;;  %v842_v0 = vmov 0.0   ;;  %vm843_vm0 = vmmov 0   ;;  %vm285_vm1 = vcmask 1043456   ;;  %vm281_vm2 = vcmask 64512   ;;  %v735_v11 = vld [vmem:[#allocation2] sm:$0xff]  }
  0x35   : > { %818 = vsyncadd (%p1051_p0), [#allocation3], 4294966784  ;;  %651 = vmatprep.subr.bf16.mxu0 %v842_v0  ;;  %653 = vmatprep.mubr.msk.bf16.mxu0 %vm843_vm0, %v842_v0  ;;  %v330_v4 = vld [vmem:[%s1037_s2] sm:$0x3]  ;;  %vm342_vm3 = vcmask 1041408   ;;  %vm338_vm4 = vcmask 31744  }
  0x36   : > { %s271_s12 = scalar_select %p270_p5, %s901_s25, 1  ;;  %657 = vmatprep.subr.bf16.mxu1 %v842_v0  ;;  %659 = vmatprep.mubr.msk.bf16.mxu1 %vm843_vm0, %v842_v0  ;;  %v344_v5 = vsel %vm342_vm3, %v330_v4, 0  ;;  %v736_v12 = vld [vmem:[#allocation2 + $0x8] sm:$0xff]   ;;  %v737_v13 = vld [vmem:[#allocation2 + $0x10] sm:$0xff]   ;;  %v628_v14 = vld [vmem:[%s1038_s3] ss:$0 sm:$0xff] }
  0x37   : > { %658 = vmatpush3.bf16.msra.mxu1 %v344_v5  ;;  %v738_v23 = vld [vmem:[#allocation2 + $0x18] sm:$0xff]   ;;  %vm471_vm5 = vcmask 523264   ;;  %v631_v29 = vld [vmem:[%s1040_s5] ss:$0 sm:$0xff]  ;;  %s268_s10 = sand.u32 1, %s829_s22   ;;  %vm525_vm6 = vcmask 516096  }
  0x38   : > { %s625_s9 = sshll.u32 %s271_s12, 2  ;;  %669 = vmatprep.subr.bf16.mxu1 %v842_v0  ;;  %s637_s12 = sshll.u32 %s901_s25, 4 }
  0x39   : > { %s277_s14 = scalar_lea.vmem %s1036_s1, %s625_s9  ;;  %s273_s17 = scalar_lea.vmem %s1035_s0, %s625_s9 }
  0x3a   : > { %v280_v1 = vld [vmem:[%s277_s14] sm:$0xf]  ;;  %s269_s9 = scalar_lea.vmem [#allocation5], %s268_s10  ;;  %s993_s15 = scalar_lea.hbm %s1041_s6, %s637_s12 }
  0x3b   : > { %v279_v2 = vld [vmem:[%s273_s17] sm:$0xf]  ;;  %v287_v3 = vsel %vm285_vm1, %v280_v1, 0  ;;  %s540_s11 = sshll.u32 %s269_s9, 4  ;;  %s528_s16 = scalar_lea.sflag [#allocation4], %s268_s10  ;;  %s995_s11 = int_to_ptr.vmem [resolvable:$true] %s540_s11 }
  0x3c   : > { %652 = vmatpush3.bf16.msra.mxu0 %v287_v3  ;;  %s771_s17 = scalar_lea.vmem %s995_s11, 16  ;;  %p1052_p9 = scmp.ne.s32.totalorder %s1045_s7, 0 }
  0x3d   : > { %663 = vmatprep.subr.bf16.mxu0 %v842_v0  ;;  %p772_p6 = scmp.ne.s32.totalorder %s995_s11, %s771_s17  ;;  %s844_s25 = smov [#allocation5]  }
  0x3e   : > { %s775_s18 = sshll.u32 %s844_s25, 4  ;;  %s776_s18 = int_to_ptr.vmem [resolvable:$false] %s775_s18 }
  0x3f   : > { %654 = vmatmul.mubr.msk.bf16.vlgmr.msra.gmra.mrb[0].mxu0 %vm281_vm2, %v279_v2  ;;  %p773_p10 = pnand %p772_p6, %p1052_p9  ;;  %s777_s19 = scalar_lea.vmem %s776_s18, 32 }
  0x40   : > { %665 = vmatprep.mubr.msk.bf16.mxu0 %vm843_vm0, %v842_v0  ;;  %p778_p2 = scmp.lt.s32.totalorder %s995_s11, %s776_s18  ;;  %p779_p3 = scmp.lt.s32.totalorder %s777_s19, %s771_s17 }
  0x41   : > { %p774_p12 = pneg %p773_p10 }
  0x42   : > { %p780_p4 = por %p779_p3, %p778_p2 }
  0x44   : > { %p781_p7 = pnand %p780_p4, %p774_p12 }
 0x112   : > { %v323_v6 = vpop.f32.mrb[0].mxu0 }
 0x113   : > { %v329_v7 = vpack.c.bf16 %v323_v6, %v323_v6  ;;  %v655_v8 = vpop.f32.mrb[1].mxu0 }
 0x114   : > { %v326_v9 = vpop.f32.mrb[2].mxu0 }
 0x115   : > { %v656_v10 = vpop.f32.mrb[3].mxu0  ;;  %660 = vmatmul.mubr.msk.bf16.vlgmr.msra.gmra.mrb[0].mxu1 %vm338_vm4, %v329_v7 }
 0x116   : > { %677 = vmatprep.mubr.msk.bf16.mxu1 %vm843_vm0, %v842_v0  ;;  %670 = vmatpush3.bf16.msra.mxu1 %v735_v11 }
 0x117   : > { %671 = vmatprep.subr.bf16.mxu1 %v842_v0 }
 0x11a   : > { %672 = vmatpush3.bf16.msra.mxu1 %v736_v12 }
 0x11b   : > { %673 = vmatprep.subr.bf16.mxu1 %v842_v0 }
 0x11e   : > { %674 = vmatpush3.bf16.msra.mxu1 %v737_v13 }
 0x11f   : > { %675 = vmatprep.subr.bf16.mxu1 %v842_v0 }
 0x122   : > { %676 = vmatpush3.bf16.msra.mxu1 %v738_v23 }
 0x1e8   : > { %v380_v15 = vpop.f32.mrb[0].mxu1 }
 0x1e9   : > { %v381_v16 = vadd.f32 %v628_v14, %v380_v15  ;;  %v661_v17 = vpop.f32.mrb[1].mxu1 }
 0x1ea   : > { %v383_v18 = vpop.f32.mrb[2].mxu1 }
 0x1eb   : > { %739 = vtanh.f32 %v381_v16  ;;  %v662_v19 = vpop.f32.mrb[3].mxu1 }
 0x1f5   : > { %v740_v20 = vpop.eup %739 }
 0x1f6   : > { %v387_v21 = vpack.c.bf16 %v740_v20, %v740_v20 }
 0x1f8   : > { %v389_v22 = vsel %vm285_vm1, %v387_v21, 0 }
 0x1f9   : > { %664 = vmatpush3.bf16.msra.mxu0 %v389_v22 }
 0x1fc   : > { %666 = vmatmul.mubr.msk.bf16.vlgmr.msra.gmra.mrb[4].mxu0 %vm281_vm2, %v279_v2 }
 0x2cf   : > { %v425_v24 = vpop.f32.mrb[4].mxu0 }
 0x2d0   : > { %v431_v25 = vpack.c.bf16 %v425_v24, %v425_v24  ;;  %v667_v26 = vpop.f32.mrb[5].mxu0 }
 0x2d1   : > { %v428_v27 = vpop.f32.mrb[6].mxu0 }
 0x2d2   : > { %678 = vmatmul.mubr.msk.bf16.vlgmr.msra.gmra.mrb[4].mxu1 %vm471_vm5, %v431_v25  ;;  %v668_v28 = vpop.f32.mrb[7].mxu0 }
 0x3a5   : > { %v509_v30 = vpop.f32.mrb[4].mxu1 }
 0x3a6   : > { %v510_v31 = vadd.f32 %v631_v29, %v509_v30  ;;  %v679_v32 = vpop.f32.mrb[5].mxu1 }
 0x3a7   : > { %v512_v33 = vpop.f32.mrb[6].mxu1 }
 0x3a8   : > { %741 = vtanh.f32 %v510_v31  ;;  %v680_v34 = vpop.f32.mrb[7].mxu1 }
 0x3b2   : > { %v742_v35 = vpop.eup %741 }
 0x3b3   : > { %v516_v36 = vsel %vm471_vm5, %v742_v35, 0.0 }
 0x3b4   : > { %v517_v37 = vrot.slane %v516_v36, 4 }
 0x3b6   : > { %v518_v38 = vadd.f32 %v517_v37, %v516_v36 }
 0x3b8   : > { %v519_v39 = vrot.slane %v518_v38, 2 }
 0x3ba   : > { %v520_v40 = vadd.f32 %v519_v39, %v518_v38 }
 0x3bc   : > { %v521_v41 = vrot.slane %v520_v40, 1 }
 0x3be   : > { %v522_v42 = vadd.f32 %v521_v41, %v520_v40 }
 0x3c0   : > { %v524_v43 = vmul.f32 0.125, %v522_v42 }
 0x3c2   : > { %526 = vst.msk [vmem:[%s269_s9] sm:$0x1] %vm525_vm6, %v524_v43 }
 0x3c3   : > { %784 = shalt.err (!%p781_p7)
}
 0x3c4   : > { %s785_s20 = scalar_lea.hbm %s993_s15, 16  ;;  %s789_s29 = scalar_lea.hbm %s1041_s6, 32 }
 0x3c5   : > { %p786_p8 = scmp.ne.s32.totalorder %s993_s15, %s785_s20  ;;  %p790_p1 = scmp.lt.u32.totalorder %s993_s15, %s1041_s6 }
 0x3c6   : > { %p791_p0 = scmp.lt.u32.totalorder %s789_s29, %s785_s20  ;;  %p793_p6 = scmp.lt.u32.totalorder %s785_s20, %s993_s15 }
 0x3c7   : > { %p787_p11 = pnand %p786_p8, %p1052_p9 }
 0x3c8   : > { %p792_p5 = por %p791_p0, %p790_p1 }
 0x3c9   : > { %p788_p13 = pneg %p787_p11 }
 0x3ca   : > { %p794_p10 = por %p793_p6, %p792_p5 }
 0x3cc   : > { %p795_p12 = pnand %p794_p10, %p788_p13 }
 0x3ce   : > { %798 = shalt.err (!%p795_p12)
}
 0x3cf   : > { %685 = dma.vmem_to_hbm [thread:$0]  (%p1052_p9), %s995_s11, 16, %s993_s15, %s528_s16  }
 0x3d0 PF: > { %p697_p2 = scmp.ge.s32.totalorder %s837_s24, 2  ;;  %s552_s9 = sand.u32 1, %s825_s21  }
 0x3d1   : > { %p1053_p3 = scmp.ne.s32.totalorder %s1046_s8, 0  ;;  %s553_s13 = scalar_lea.sflag [#allocation4], %s552_s9 }
 0x3d3   : > { %p692_p4 = pnand %p697_p2, %p1053_p3 }
 0x3d5   : > { %820 = dma.done.wait (!%p692_p4), %s553_s13, 16  }
 0x3d6   : > { %822 = vsyncadd (!%p692_p4), %s553_s13, 4294967280  ;;  %p17_p7 = scmp.ge.s32.totalorder %s905_s27, 4   ;;  %s1054_s21 = smov %s829_s22 }
 0x3d7   : > { %s1055_s22 = smov %s833_s23  ;;  %s1056_s23 = smov %s916_s30 }
 0x3d8   : > { %s1057_s24 = smov %s905_s27  ;;  %19 = sbr.rel (!%p17_p7) target bundleno = 4 (0x4), region = 87 }
 0x3df   :  { %557 = vsyncpa [#allocation3], 1 }
 0x3e0   :  { %559 = vsyncpa [#allocation3 + $0x1], 1 }
 0x3e1   :  { %560 = vsyncpa [#allocation4], 1 }
 0x3e2   :  { %562 = vsyncpa [#allocation4 + $0x1], 1 }

</bundles_post_ra>
